<compile_context>
chip_gen: v7x
topology: tpu7x:2x2x1
jax: 0.10.0
libtpu: 0.0.40
codegen_flags: <defaults>
</compile_context>

<pallas_src>
import functools

import jax
import jax.numpy as jnp
from jax.experimental import pallas as pl
from jax.experimental.pallas import tpu as pltpu

THRESHOLD = 1.0
DECAY = 0.9

_LANE_DENSE_OK = True  # flips to False if the lane-dense pack fails to lower


def _round_up(x, m):
    return ((x + m - 1) // m) * m


def _vmem_params():
    """(double-buffer budget, scoped-vmem limit) per TPU generation."""
    try:
        kind = jax.devices()[0].device_kind.lower()
    except Exception:
        kind = ""
    if "v7" in kind:
        # 64 MiB VMEM per TensorCore: stay well under it.
        return 24 * 1024 * 1024, 48 * 1024 * 1024
    if any(t in kind for t in ("v6", "v5e", "v5 lite", "v5lite", "v5p", "v4")):
        # 128 MiB parts: big blocks recover >=85% of HBM roofline.
        return 44 * 1024 * 1024, 100 * 1024 * 1024
    return 12 * 1024 * 1024, 32 * 1024 * 1024  # unknown part: conservative


def _lif_kernel(x_ref, mem_ref, spike_ref, new_mem_ref, acc_ref, *,
                lane_dense, h_total, h_block):
    # x_ref: (BM, HK) input currents (native dtype).
    # mem_ref / spike_ref / new_mem_ref: (1, BM) if lane_dense else (BM, 1).
    # acc_ref: (BM, 1) f32 running row-sum across the H ("arbitrary") axis.
    k = pl.program_id(1)

    x = x_ref[...].astype(jnp.float32)
    if h_block != h_total:
        # H is split across the k axis; the last k block may hang over the end
        # of H and its padded lanes hold garbage -> mask them out of the sum.
        lane = jax.lax.broadcasted_iota(jnp.int32, x.shape, 1)
        x = jnp.where(lane + k * h_block < h_total, x, 0.0)

    @pl.when(k == 0)
    def _():
        acc_ref[...] = jnp.zeros_like(acc_ref)

    # Row sum: VPU lane adds + one XLU cross-lane reduce, hidden under the DMA.
    acc_ref[...] += jnp.sum(x, axis=1, keepdims=True)

    @pl.when(k == pl.num_programs(1) - 1)
    def _():
        col = acc_ref[...]                                    # (BM, 1)
        if lane_dense:
            bm = col.shape[0]
            # Sublane->lane pack: lane-replicate the column and do one aligned
            # (BM,128)->(128,BM) XLU transpose; row 0 is the packed sum.  Keeps
            # the state math and both output stores lane-dense (unmasked vst).
            isum = jnp.transpose(jnp.broadcast_to(col, (bm, 128)))[0:1, :]
        else:
            isum = col                                        # (BM, 1) column
        mem = DECAY * mem_ref[...] + isum                     # leaky integrate
        spike = (mem >= THRESHOLD).astype(jnp.float32)        # fire
        new_mem_ref[...] = mem - spike * THRESHOLD            # soft reset
        spike_ref[...] = spike


def lif_forward(inputs, membrane=None):
    """One LIF step.  Returns (spike, new_membrane), both shaped (B,)."""
    global _LANE_DENSE_OK

    x = jnp.asarray(inputs)
    if x.ndim == 1:
        x = x[None, :]                     # torch's un-batched path == batch 1
    if x.ndim != 2:
        raise ValueError("lif_forward expects 1-D (H,) or 2-D (B, H) inputs")
    if x.dtype not in (jnp.float32, jnp.bfloat16):
        x = x.astype(jnp.float32)
    B, H = x.shape

    if membrane is None:
        mem = jnp.zeros((B,), jnp.float32)
    else:
        mem = jnp.asarray(membrane, jnp.float32).reshape(-1)
        if mem.shape[0] != B:              # torch: zeros(1) buffer .repeat(B)
            mem = jnp.broadcast_to(mem, (B,))

    # ---- tiling -------------------------------------------------------------
    itemsize = x.dtype.itemsize
    budget, vmem_limit = _vmem_params()
    # Per-row VMEM bytes: double-buffered input + lane-pack transients + state.
    pack_bytes = (2 * 128 + 32) * 4
    HK = H
    bm_cap = budget // max(2 * H * itemsize + pack_bytes, 1)
    if bm_cap >= 128:
        BM = (bm_cap // 128) * 128          # full-H row blocks
    else:
        # Very large H: split the row-sum over the inner ("arbitrary") axis.
        BM = 128
        hk_cap = max((budget - BM * pack_bytes) // (2 * BM * itemsize), 128)
        HK = max(128, (hk_cap // 128) * 128)

    if B >= 128:
        BM = min(BM, (B // 128) * 128)      # never let a block exceed the array
        if B >= 256:
            # >= 2 row blocks so ("parallel", ...) can use both v7x TensorCores
            # (no-op on single-core v5e/v6e).
            BM = min(BM, _round_up(pl.cdiv(B, 2), 128))
        BM = max(BM, 128)
        Bo = B
        x_k, mem_k = x, mem                 # no padding at all
    else:
        # Tiny batch: pad rows up to a single aligned block (everything is tiny).
        BM = 128
        Bo = 128
        x_k = jnp.pad(x, ((0, Bo - B), (0, 0)))
        mem_k = jnp.pad(mem, (0, Bo - B))

    nb = pl.cdiv(Bo, BM)
    nk = pl.cdiv(H, HK)

    cost = pl.CostEstimate(flops=B * H + 4 * B, transcendentals=0,
                           bytes_accessed=B * H * itemsize + 3 * B * 4)

    def run(lane_dense):
        if lane_dense:
            state_shape, state_block = (1, Bo), (1, BM)
            state_map = lambda i, k: (0, i)
            mem_in = mem_k.reshape(1, Bo)
        else:
            state_shape, state_block = (Bo, 1), (BM, 1)
            state_map = lambda i, k: (i, 0)
            mem_in = mem_k.reshape(Bo, 1)

        kernel = functools.partial(_lif_kernel, lane_dense=lane_dense,
                                   h_total=H, h_block=HK)
        out_sds = jax.ShapeDtypeStruct(state_shape, jnp.float32)
        spike, new_mem = pl.pallas_call(
            kernel,
            out_shape=(out_sds, out_sds),
            grid=(nb, nk),
            in_specs=[pl.BlockSpec((BM, HK), lambda i, k: (i, k)),
                      pl.BlockSpec(state_block, state_map)],
            out_specs=(pl.BlockSpec(state_block, state_map),
                       pl.BlockSpec(state_block, state_map)),
            scratch_shapes=[pltpu.VMEM((BM, 1), jnp.float32)],
            # Membrane state is updated in place (recurrent stepping use case).
            input_output_aliases={1: 1},
            compiler_params=pltpu.CompilerParams(
                dimension_semantics=("parallel", "arbitrary"),
                vmem_limit_bytes=vmem_limit),
            cost_estimate=cost,
        )(x_k, mem_in)
        return spike.reshape(Bo)[:B], new_mem.reshape(Bo)[:B]

    if _LANE_DENSE_OK:
        try:
            out = run(True)
            jax.block_until_ready(out)
            return out
        except Exception:
            # Lane-dense pack rejected by this toolchain: column fallback.
            _LANE_DENSE_OK = False
    return run(False)


def _lif_ref(x, membrane=None):
    """Plain-JAX reference for one LIF step."""
    x = jnp.asarray(x, jnp.float32)
    if x.ndim == 1:
        x = x[None, :]
    B = x.shape[0]
    mem = (jnp.zeros((B,), jnp.float32) if membrane is None
           else jnp.asarray(membrane, jnp.float32).reshape(B))
    mem = DECAY * mem + jnp.sum(x, axis=1)
    spike = (mem >= THRESHOLD).astype(jnp.float32)
    return spike, mem - spike * THRESHOLD


if __name__ == "__main__":
    # Small shape consistent with the module's usage (batch of hidden vectors).
    key = jax.random.PRNGKey(0)
    B, H = 2, 32
    x = jax.random.normal(key, (B, H), dtype=jnp.float32)

    spike, new_mem = lif_forward(x)
    jax.block_until_ready((spike, new_mem))

    spike_exp, mem_exp = _lif_ref(x)
    assert spike.shape == (B,) and new_mem.shape == (B,)
    assert jnp.array_equal(spike, spike_exp), (spike, spike_exp)
    assert jnp.allclose(new_mem, mem_exp, atol=1e-5), (new_mem, mem_exp)

    # Second step with carried membrane + non-aligned shapes: exercises the
    # multi-row-block grid, ragged B (300) and ragged H (200) with no padding.
    x2 = 0.05 * jax.random.normal(jax.random.PRNGKey(1), (300, 200), jnp.float32)
    mem0 = 0.1 * jax.random.normal(jax.random.PRNGKey(2), (300,), jnp.float32)
    spike2, new_mem2 = lif_forward(x2, mem0)
    jax.block_until_ready((spike2, new_mem2))

    spike2_exp, mem2_exp = _lif_ref(x2, mem0)
    assert jnp.array_equal(spike2, spike2_exp)
    assert jnp.allclose(new_mem2, mem2_exp, atol=1e-4)

    print("KERNEL_OK")
</pallas_src>

<mosaic_0001>
module attributes {stable_mosaic.version = 11 : i64} {
  func.func @_lif_kernel(%arg0: i32, %arg1: i32, %arg2: memref<128x32xf32, #tpu.memory_space<vmem>>, %arg3: memref<1x128xf32, #tpu.memory_space<vmem>>, %arg4: memref<1x128xf32, #tpu.memory_space<vmem>>, %arg5: memref<1x128xf32, #tpu.memory_space<vmem>>, %arg6: memref<128x1xf32, #tpu.memory_space<vmem>>) attributes {dimension_semantics = [#tpu.dimension_semantics<parallel>, #tpu.dimension_semantics<arbitrary>], iteration_bounds = array<i64: 1, 1>, scalar_prefetch = 0 : i64, scratch_operands = 1 : i64, tpu.core_type = #tpu.core_type<tc>, window_params = [{transform_indices = @transform_0, window_bounds = array<i64: 128, 32>}, {transform_indices = @transform_1, window_bounds = array<i64: 1, 128>}, {transform_indices = @transform_2, window_bounds = array<i64: 1, 128>}, {transform_indices = @transform_3, window_bounds = array<i64: 1, 128>}]} {
    %c0 = arith.constant 0 : index
    %c0_0 = arith.constant 0 : index
    %0 = vector.load %arg2[%c0, %c0_0] : memref<128x32xf32, #tpu.memory_space<vmem>>, vector<128x32xf32>
    %c0_i32 = arith.constant 0 : i32
    %1 = arith.cmpi eq, %arg1, %c0_i32 : i32
    %2 = arith.extui %1 : i1 to i32
    %c0_i32_1 = arith.constant 0 : i32
    %3 = arith.cmpi ne, %2, %c0_i32_1 : i32
    scf.if %3 {
      %cst_8 = arith.constant 0.000000e+00 : f32
      %12 = vector.broadcast %cst_8 : f32 to vector<128x1xf32>
      %c0_9 = arith.constant 0 : index
      %c0_10 = arith.constant 0 : index
      %13 = vector.load %arg6[%c0_9, %c0_10] : memref<128x1xf32, #tpu.memory_space<vmem>>, vector<128x1xf32>
      tpu.vector_store %arg6[%c0_9, %c0_10], %12 {strides = array<i32>} : memref<128x1xf32, #tpu.memory_space<vmem>>, vector<128x1xf32>,
    } else {
    }
    %c0_2 = arith.constant 0 : index
    %c0_3 = arith.constant 0 : index
    %4 = vector.load %arg6[%c0_2, %c0_3] : memref<128x1xf32, #tpu.memory_space<vmem>>, vector<128x1xf32>
    %cst = arith.constant dense<0.000000e+00> : vector<128xf32>
    %5 = vector.multi_reduction <add>, %0, %cst [1] : vector<128x32xf32> to vector<128xf32>
    %6 = vector.shape_cast %5 : vector<128xf32> to vector<128x1xf32>
    %7 = arith.addf %4, %6 : vector<128x1xf32>
    %c0_4 = arith.constant 0 : index
    %c0_5 = arith.constant 0 : index
    %8 = vector.load %arg6[%c0_4, %c0_5] : memref<128x1xf32, #tpu.memory_space<vmem>>, vector<128x1xf32>
    tpu.vector_store %arg6[%c0_4, %c0_5], %7 {strides = array<i32>} : memref<128x1xf32, #tpu.memory_space<vmem>>, vector<128x1xf32>,
    %c0_i32_6 = arith.constant 0 : i32
    %9 = arith.cmpi eq, %arg1, %c0_i32_6 : i32
    %10 = arith.extui %9 : i1 to i32
    %c0_i32_7 = arith.constant 0 : i32
    %11 = arith.cmpi ne, %10, %c0_i32_7 : i32
    scf.if %11 {
      %c0_8 = arith.constant 0 : index
      %c0_9 = arith.constant 0 : index
      %12 = vector.load %arg6[%c0_8, %c0_9] : memref<128x1xf32, #tpu.memory_space<vmem>>, vector<128x1xf32>
      %13 = vector.shape_cast %12 : vector<128x1xf32> to vector<128x1xf32>
      %14 = vector.broadcast %13 : vector<128x1xf32> to vector<128x128xf32>
      %15 = tpu.transpose %14, [1, 0] : vector<128x128xf32> -> vector<128x128xf32>
      %16 = vector.extract_strided_slice %15 {offsets = [0, 0], sizes = [1, 128], strides = [1, 1]} : vector<128x128xf32> to vector<1x128xf32>
      %c0_10 = arith.constant 0 : index
      %c0_11 = arith.constant 0 : index
      %17 = vector.load %arg3[%c0_10, %c0_11] : memref<1x128xf32, #tpu.memory_space<vmem>>, vector<1x128xf32>
      %cst_12 = arith.constant 0.899999976 : f32
      %18 = vector.broadcast %cst_12 : f32 to vector<1x128xf32>
      %19 = arith.mulf %18, %17 : vector<1x128xf32>
      %20 = arith.addf %19, %16 : vector<1x128xf32>
      %cst_13 = arith.constant 1.000000e+00 : f32
      %21 = vector.broadcast %cst_13 : f32 to vector<1x128xf32>
      %22 = arith.cmpf oge, %20, %21 : vector<1x128xf32>
      %23 = arith.extui %22 : vector<1x128xi1> to vector<1x128xi32>
      %24 = arith.sitofp %23 : vector<1x128xi32> to vector<1x128xf32>
      %cst_14 = arith.constant 1.000000e+00 : f32
      %25 = vector.broadcast %cst_14 : f32 to vector<1x128xf32>
      %26 = arith.mulf %24, %25 : vector<1x128xf32>
      %27 = arith.subf %20, %26 : vector<1x128xf32>
      %c0_15 = arith.constant 0 : index
      %c0_16 = arith.constant 0 : index
      %28 = vector.load %arg5[%c0_15, %c0_16] : memref<1x128xf32, #tpu.memory_space<vmem>>, vector<1x128xf32>
      tpu.vector_store %arg5[%c0_15, %c0_16], %27 {strides = array<i32>} : memref<1x128xf32, #tpu.memory_space<vmem>>, vector<1x128xf32>,
      %c0_17 = arith.constant 0 : index
      %c0_18 = arith.constant 0 : index
      %29 = vector.load %arg4[%c0_17, %c0_18] : memref<1x128xf32, #tpu.memory_space<vmem>>, vector<1x128xf32>
      tpu.vector_store %arg4[%c0_17, %c0_18], %24 {strides = array<i32>} : memref<1x128xf32, #tpu.memory_space<vmem>>, vector<1x128xf32>,
    } else {
    }
    return
  }
  func.func @transform_0(%arg0: i32, %arg1: i32) -> (i32, i32) {
    %c0_i32 = arith.constant 0 : i32
    return %arg0, %arg1 : i32, i32
  }
  func.func @transform_1(%arg0: i32, %arg1: i32) -> (i32, i32) {
    %c0_i32 = arith.constant 0 : i32
    %c0_i32_0 = arith.constant 0 : i32
    return %c0_i32, %arg0 : i32, i32
  }
  func.func @transform_2(%arg0: i32, %arg1: i32) -> (i32, i32) {
    %c0_i32 = arith.constant 0 : i32
    %c0_i32_0 = arith.constant 0 : i32
    return %c0_i32, %arg0 : i32, i32
  }
  func.func @transform_3(%arg0: i32, %arg1: i32) -> (i32, i32) {
    %c0_i32 = arith.constant 0 : i32
    %c0_i32_0 = arith.constant 0 : i32
    return %c0_i32, %arg0 : i32, i32
  }
}

module attributes {stable_mosaic.version = 11 : i64} {
  func.func @_lif_kernel(%arg0: i32, %arg1: i32, %arg2: memref<128x32xf32, #tpu.memory_space<vmem>>, %arg3: memref<128x1xf32, #tpu.memory_space<vmem>>, %arg4: memref<128x1xf32, #tpu.memory_space<vmem>>, %arg5: memref<128x1xf32, #tpu.memory_space<vmem>>, %arg6: memref<128x1xf32, #tpu.memory_space<vmem>>) attributes {dimension_semantics = [#tpu.dimension_semantics<parallel>, #tpu.dimension_semantics<arbitrary>], iteration_bounds = array<i64: 1, 1>, scalar_prefetch = 0 : i64, scratch_operands = 1 : i64, tpu.core_type = #tpu.core_type<tc>, window_params = [{transform_indices = @transform_0, window_bounds = array<i64: 128, 32>}, {transform_indices = @transform_1, window_bounds = array<i64: 128, 1>}, {transform_indices = @transform_2, window_bounds = array<i64: 128, 1>}, {transform_indices = @transform_3, window_bounds = array<i64: 128, 1>}]} {
    %c0 = arith.constant 0 : index
    %c0_0 = arith.constant 0 : index
    %0 = vector.load %arg2[%c0, %c0_0] : memref<128x32xf32, #tpu.memory_space<vmem>>, vector<128x32xf32>
    %c0_i32 = arith.constant 0 : i32
    %1 = arith.cmpi eq, %arg1, %c0_i32 : i32
    %2 = arith.extui %1 : i1 to i32
    %c0_i32_1 = arith.constant 0 : i32
    %3 = arith.cmpi ne, %2, %c0_i32_1 : i32
    scf.if %3 {
      %cst_8 = arith.constant 0.000000e+00 : f32
      %12 = vector.broadcast %cst_8 : f32 to vector<128x1xf32>
      %c0_9 = arith.constant 0 : index
      %c0_10 = arith.constant 0 : index
      %13 = vector.load %arg6[%c0_9, %c0_10] : memref<128x1xf32, #tpu.memory_space<vmem>>, vector<128x1xf32>
      tpu.vector_store %arg6[%c0_9, %c0_10], %12 {strides = array<i32>} : memref<128x1xf32, #tpu.memory_space<vmem>>, vector<128x1xf32>,
    } else {
    }
    %c0_2 = arith.constant 0 : index
    %c0_3 = arith.constant 0 : index
    %4 = vector.load %arg6[%c0_2, %c0_3] : memref<128x1xf32, #tpu.memory_space<vmem>>, vector<128x1xf32>
    %cst = arith.constant dense<0.000000e+00> : vector<128xf32>
    %5 = vector.multi_reduction <add>, %0, %cst [1] : vector<128x32xf32> to vector<128xf32>
    %6 = vector.shape_cast %5 : vector<128xf32> to vector<128x1xf32>
    %7 = arith.addf %4, %6 : vector<128x1xf32>
    %c0_4 = arith.constant 0 : index
    %c0_5 = arith.constant 0 : index
    %8 = vector.load %arg6[%c0_4, %c0_5] : memref<128x1xf32, #tpu.memory_space<vmem>>, vector<128x1xf32>
    tpu.vector_store %arg6[%c0_4, %c0_5], %7 {strides = array<i32>} : memref<128x1xf32, #tpu.memory_space<vmem>>, vector<128x1xf32>,
    %c0_i32_6 = arith.constant 0 : i32
    %9 = arith.cmpi eq, %arg1, %c0_i32_6 : i32
    %10 = arith.extui %9 : i1 to i32
    %c0_i32_7 = arith.constant 0 : i32
    %11 = arith.cmpi ne, %10, %c0_i32_7 : i32
    scf.if %11 {
      %c0_8 = arith.constant 0 : index
      %c0_9 = arith.constant 0 : index
      %12 = vector.load %arg6[%c0_8, %c0_9] : memref<128x1xf32, #tpu.memory_space<vmem>>, vector<128x1xf32>
      %c0_10 = arith.constant 0 : index
      %c0_11 = arith.constant 0 : index
      %13 = vector.load %arg3[%c0_10, %c0_11] : memref<128x1xf32, #tpu.memory_space<vmem>>, vector<128x1xf32>
      %cst_12 = arith.constant 0.899999976 : f32
      %14 = vector.broadcast %cst_12 : f32 to vector<128x1xf32>
      %15 = arith.mulf %14, %13 : vector<128x1xf32>
      %16 = arith.addf %15, %12 : vector<128x1xf32>
      %cst_13 = arith.constant 1.000000e+00 : f32
      %17 = vector.broadcast %cst_13 : f32 to vector<128x1xf32>
      %18 = arith.cmpf oge, %16, %17 : vector<128x1xf32>
      %19 = arith.extui %18 : vector<128x1xi1> to vector<128x1xi32>
      %20 = arith.sitofp %19 : vector<128x1xi32> to vector<128x1xf32>
      %cst_14 = arith.constant 1.000000e+00 : f32
      %21 = vector.broadcast %cst_14 : f32 to vector<128x1xf32>
      %22 = arith.mulf %20, %21 : vector<128x1xf32>
      %23 = arith.subf %16, %22 : vector<128x1xf32>
      %c0_15 = arith.constant 0 : index
      %c0_16 = arith.constant 0 : index
      %24 = vector.load %arg5[%c0_15, %c0_16] : memref<128x1xf32, #tpu.memory_space<vmem>>, vector<128x1xf32>
      tpu.vector_store %arg5[%c0_15, %c0_16], %23 {strides = array<i32>} : memref<128x1xf32, #tpu.memory_space<vmem>>, vector<128x1xf32>,
      %c0_17 = arith.constant 0 : index
      %c0_18 = arith.constant 0 : index
      %25 = vector.load %arg4[%c0_17, %c0_18] : memref<128x1xf32, #tpu.memory_space<vmem>>, vector<128x1xf32>
      tpu.vector_store %arg4[%c0_17, %c0_18], %20 {strides = array<i32>} : memref<128x1xf32, #tpu.memory_space<vmem>>, vector<128x1xf32>,
    } else {
    }
    return
  }
  func.func @transform_0(%arg0: i32, %arg1: i32) -> (i32, i32) {
    %c0_i32 = arith.constant 0 : i32
    return %arg0, %arg1 : i32, i32
  }
  func.func @transform_1(%arg0: i32, %arg1: i32) -> (i32, i32) {
    %c0_i32 = arith.constant 0 : i32
    %c0_i32_0 = arith.constant 0 : i32
    return %arg0, %c0_i32 : i32, i32
  }
  func.func @transform_2(%arg0: i32, %arg1: i32) -> (i32, i32) {
    %c0_i32 = arith.constant 0 : i32
    %c0_i32_0 = arith.constant 0 : i32
    return %arg0, %c0_i32 : i32, i32
  }
  func.func @transform_3(%arg0: i32, %arg1: i32) -> (i32, i32) {
    %c0_i32 = arith.constant 0 : i32
    %c0_i32_0 = arith.constant 0 : i32
    return %arg0, %c0_i32 : i32, i32
  }
}

</mosaic_0001>

<bundles_post_ra>
// kernel: tpu_custom_call.1
= control target key start
LH: loop header
LB: loop body
LE: loop exit
PB: predicated region body
PF: predicated region fallthrough
CT: control target
= control target key end

     0   :  { %9 = vsyncpa [#allocation4], 0  ;;  %s593_s0 = inlined_call_operand.vmem [shape: f32[128,32], index: 0, kind: input, shape index: {}]   ;;  %s594_s1 = inlined_call_operand.hbm [shape: f32[1,128], index: 1, kind: input, shape index: {}, may-alias: {1,3}]   ;;  %s595_s2 = inlined_call_operand.hbm [shape: f32[1,128], index: 2, kind: output, shape index: {0}]   ;;  %s596_s3 = inlined_call_operand.hbm [shape: f32[1,128], index: 3, kind: output, shape index: {1}, may-alias: {1,3}]  }
   0x1   :  { %10 = vsyncpa [#allocation5], 0 }
   0x2   :  { %11 = vsyncpa [#allocation8], 0  ;;  %s411_s12 = smov [#allocation3]   ;;  %s339_s16 = scalar_lea.hbm %s594_s1, 16 }
   0x3   :  { %s20_s13 = sshll.u32 %s411_s12, 4  ;;  %p340_p0 = scmp.ne.s32.totalorder %s594_s1, %s339_s16  ;;  %s21_s13 = int_to_ptr.vmem [resolvable:$true] %s20_s13 }
   0x4   :  { %p343_p1 = scmp.lt.u32.totalorder %s339_s16, %s594_s1 }
   0x6   :  { %p345_p2 = pnand %p343_p1, %p340_p0 }
   0x8   :  { %348 = shalt.err (!%p345_p2)
}
   0x9   :  { %s349_s21 = scalar_lea.vmem %s21_s13, 16  ;;  %s353_s22 = scalar_lea.vmem %s21_s13, 32 }
   0xa   :  { %p350_p3 = scmp.ne.s32.totalorder %s21_s13, %s349_s21  ;;  %p354_p4 = scmp.lt.s32.totalorder %s21_s13, %s21_s13 }
   0xb   :  { %p355_p5 = scmp.lt.s32.totalorder %s353_s22, %s349_s21 }
   0xd   :  { %p356_p6 = por %p355_p5, %p354_p4 }
   0xf   :  { %p357_p7 = pnand %p356_p6, %p350_p3 }
  0x11   :  { %360 = shalt.err (!%p357_p7)
}
  0x12   :  { %23 = dma.hbm_to_vmem [thread:$0]  %s594_s1, 16, %s21_s13, [#allocation4]  }
  0x13   :  { %405 = dma.done.wait [#allocation4], 16  }
  0x14   :  { %406 = vsyncadd [#allocation4], 4294967280  ;;  %vm47_vm0 = vcmask 7168   ;;  %v412_v0 = vmov 0.0   ;;  %vm80_vm1 = vcmask 261120   ;;  %v29_v1 = vld [vmem:[%s593_s0 + $0x10] sm:$0xff] }
  0x15   :  { %50 = vst.msk [vmem:[#allocation2 + $0x10] sm:$0xff] %vm47_vm0, %v412_v0  ;;  %48 = vst.msk [vmem:[#allocation2] sm:$0xff] %vm47_vm0, %v412_v0  ;;  %v27_v2 = vld [vmem:[%s593_s0] sm:$0xff]  ;;  %v30_v3 = vld [vmem:[%s593_s0 + $0x18] sm:$0xff]  ;;  %v87_v4 = vsel %vm80_vm1, %v29_v1, 0.0  ;;  %v413_v31 = vmov 0  }
  0x16   :  { %49 = vst.msk [vmem:[#allocation2 + $0x8] sm:$0xff] %vm47_vm0, %v412_v0  ;;  %51 = vst.msk [vmem:[#allocation2 + $0x18] sm:$0xff] %vm47_vm0, %v412_v0  ;;  %v81_v5 = vsel %vm80_vm1, %v27_v2, 0.0  ;;  %v28_v6 = vld [vmem:[%s593_s0 + $0x8] sm:$0xff]  ;;  %88 = vadd.xlane.f32.xlu1 %v87_v4  ;;  %v90_v7 = vsel %vm80_vm1, %v30_v3, 0.0  ;;  %v31_v10 = vld [vmem:[%s593_s0 + $0x20] sm:$0xff]  ;;  %337 = vset.pattern.permute.xlu0 %v413_v31 }
  0x17   :  { %52 = vst.msk [vmem:[#allocation2 + $0x20] sm:$0xff] %vm47_vm0, %v412_v0  ;;  %53 = vst.msk [vmem:[#allocation2 + $0x28] sm:$0xff] %vm47_vm0, %v412_v0  ;;  %82 = vadd.xlane.f32.xlu0 %v81_v5  ;;  %v84_v8 = vsel %vm80_vm1, %v28_v6, 0.0  ;;  %v32_v9 = vld [vmem:[%s593_s0 + $0x28] sm:$0xff]  ;;  %v93_v12 = vsel %vm80_vm1, %v31_v10, 0.0  ;;  %v34_v13 = vld [vmem:[%s593_s0 + $0x38] sm:$0xff]  ;;  %338 = vset.pattern.permute.xlu1 %v413_v31 }
  0x18   :  { %54 = vst.msk [vmem:[#allocation2 + $0x30] sm:$0xff] %vm47_vm0, %v412_v0  ;;  %55 = vst.msk [vmem:[#allocation2 + $0x38] sm:$0xff] %vm47_vm0, %v412_v0  ;;  %v96_v11 = vsel %vm80_vm1, %v32_v9, 0.0  ;;  %v33_v14 = vld [vmem:[%s593_s0 + $0x30] sm:$0xff]  ;;  %v102_v15 = vsel %vm80_vm1, %v34_v13, 0.0  ;;  %v36_v17 = vld [vmem:[%s593_s0 + $0x48] sm:$0xff] }
  0x19   :  { %56 = vst.msk [vmem:[#allocation2 + $0x40] sm:$0xff] %vm47_vm0, %v412_v0  ;;  %57 = vst.msk [vmem:[#allocation2 + $0x48] sm:$0xff] %vm47_vm0, %v412_v0  ;;  %v99_v16 = vsel %vm80_vm1, %v33_v14, 0.0  ;;  %v35_v18 = vld [vmem:[%s593_s0 + $0x40] sm:$0xff]  ;;  %v108_v19 = vsel %vm80_vm1, %v36_v17, 0.0  ;;  %v38_v21 = vld [vmem:[%s593_s0 + $0x58] sm:$0xff] }
  0x1a   :  { %58 = vst.msk [vmem:[#allocation2 + $0x50] sm:$0xff] %vm47_vm0, %v412_v0  ;;  %59 = vst.msk [vmem:[#allocation2 + $0x58] sm:$0xff] %vm47_vm0, %v412_v0  ;;  %91 = vadd.xlane.f32.xlu1 %v90_v7  ;;  %v105_v20 = vsel %vm80_vm1, %v35_v18, 0.0  ;;  %v37_v22 = vld [vmem:[%s593_s0 + $0x50] sm:$0xff]  ;;  %v114_v23 = vsel %vm80_vm1, %v38_v21, 0.0  ;;  %v40_v25 = vld [vmem:[%s593_s0 + $0x68] sm:$0xff] }
  0x1b   :  { %60 = vst.msk [vmem:[#allocation2 + $0x60] sm:$0xff] %vm47_vm0, %v412_v0  ;;  %61 = vst.msk [vmem:[#allocation2 + $0x68] sm:$0xff] %vm47_vm0, %v412_v0  ;;  %85 = vadd.xlane.f32.xlu0 %v84_v8  ;;  %v111_v24 = vsel %vm80_vm1, %v37_v22, 0.0  ;;  %v39_v26 = vld [vmem:[%s593_s0 + $0x60] sm:$0xff]  ;;  %v120_v27 = vsel %vm80_vm1, %v40_v25, 0.0  ;;  %v42_v29 = vld [vmem:[%s593_s0 + $0x78] sm:$0xff] }
  0x1c   :  { %62 = vst.msk [vmem:[#allocation2 + $0x70] sm:$0xff] %vm47_vm0, %v412_v0  ;;  %63 = vst.msk [vmem:[#allocation2 + $0x78] sm:$0xff] %vm47_vm0, %v412_v0  ;;  %v117_v28 = vsel %vm80_vm1, %v39_v26, 0.0  ;;  %v41_v30 = vld [vmem:[%s593_s0 + $0x70] sm:$0xff]  ;;  %v126_v32 = vsel %vm80_vm1, %v42_v29, 0.0  ;;  %v64_v35 = vld [vmem:[#allocation2] sm:$0xff] }
  0x1d   :  { %v123_v33 = vsel %vm80_vm1, %v41_v30, 0.0  ;;  %v66_v34 = vld [vmem:[#allocation2 + $0x10] sm:$0xff]  ;;  %v67_v40 = vld [vmem:[#allocation2 + $0x18] sm:$0xff]  ;;  %v65_v41 = vld [vmem:[#allocation2 + $0x8] sm:$0xff]  ;;  %s414_s0 = smov [#allocation6]   ;;  %s415_s29 = smov [#allocation7]  }
  0x1e   :  { %97 = vadd.xlane.f32.xlu1 %v96_v11  ;;  %v69_v46 = vld [vmem:[#allocation2 + $0x28] sm:$0xff]  ;;  %v68_v47 = vld [vmem:[#allocation2 + $0x20] sm:$0xff]  ;;  %s308_s28 = sshll.u32 %s414_s0, 4  ;;  %s318_s30 = sshll.u32 %s415_s29, 4  ;;  %s309_s28 = int_to_ptr.vmem [resolvable:$true] %s308_s28  ;;  %s561_s30 = int_to_ptr.vmem [resolvable:$true] %s318_s30 }
  0x1f   :  { %94 = vadd.xlane.f32.xlu0 %v93_v12  ;;  %v71_v53 = vld [vmem:[#allocation2 + $0x38] sm:$0xff]  ;;  %v70_v54 = vld [vmem:[#allocation2 + $0x30] sm:$0xff]  ;;  %s361_s4 = scalar_lea.vmem %s309_s28, 16  ;;  %s365_s5 = scalar_lea.vmem %s309_s28, 32 }
  0x20   :  { %v73_v60 = vld [vmem:[#allocation2 + $0x48] sm:$0xff]  ;;  %v72_v61 = vld [vmem:[#allocation2 + $0x40] sm:$0xff]  ;;  %p362_p8 = scmp.ne.s32.totalorder %s309_s28, %s361_s4  ;;  %p366_p9 = scmp.lt.s32.totalorder %s309_s28, %s309_s28 }
  0x21   :  { %v75_v4 = vld [vmem:[#allocation2 + $0x58] sm:$0xff]  ;;  %v74_v5 = vld [vmem:[#allocation2 + $0x50] sm:$0xff]  ;;  %p367_p10 = scmp.lt.s32.totalorder %s365_s5, %s361_s4 }
  0x22   :  { %103 = vadd.xlane.f32.xlu1 %v102_v15  ;;  %v77_v11 = vld [vmem:[#allocation2 + $0x68] sm:$0xff]  ;;  %v76_v12 = vld [vmem:[#allocation2 + $0x60] sm:$0xff] }
  0x23   :  { %100 = vadd.xlane.f32.xlu0 %v99_v16  ;;  %p368_p11 = por %p367_p10, %p366_p9 }
  0x25   :  { %p369_p12 = pnand %p368_p11, %p362_p8 }
  0x26   :  { %109 = vadd.xlane.f32.xlu1 %v108_v19  ;;  %v79_v19 = vld [vmem:[#allocation2 + $0x78] sm:$0xff] }
  0x27   :  { %106 = vadd.xlane.f32.xlu0 %v105_v20  ;;  %v78_v20 = vld [vmem:[#allocation2 + $0x70] sm:$0xff] }
  0x2a   :  { %115 = vadd.xlane.f32.xlu1 %v114_v23 }
  0x2b   :  { %112 = vadd.xlane.f32.xlu0 %v111_v24 }
  0x2e   :  { %121 = vadd.xlane.f32.xlu1 %v120_v27 }
  0x2f   :  { %118 = vadd.xlane.f32.xlu0 %v117_v28 }
  0x32   :  { %127 = vadd.xlane.f32.xlu1 %v126_v32 }
  0x33   :  { %124 = vadd.xlane.f32.xlu0 %v123_v33 }
  0xa3   :  { %v89_v36 = vpop.xlane.xlu1 %88 }
  0xa4   :  { %v83_v37 = vpop.xlane.xlu0 %82  ;;  %v131_v38 = vadd.f32 %v89_v36, %v66_v34 }
  0xa5   :  { %v129_v39 = vadd.f32 %v83_v37, %v64_v35 }
  0xa6   :  { %148 = vst.msk [vmem:[#allocation2 + $0x10] sm:$0xff] %vm47_vm0, %v131_v38 }
  0xa7   :  { %146 = vst.msk [vmem:[#allocation2] sm:$0xff] %vm47_vm0, %v129_v39  ;;  %v92_v42 = vpop.xlane.xlu1 %91 }
  0xa8   :  { %v86_v43 = vpop.xlane.xlu0 %85  ;;  %v132_v44 = vadd.f32 %v92_v42, %v67_v40 }
  0xa9   :  { %v130_v45 = vadd.f32 %v86_v43, %v65_v41 }
  0xaa   :  { %149 = vst.msk [vmem:[#allocation2 + $0x18] sm:$0xff] %vm47_vm0, %v132_v44 }
  0xab   :  { %147 = vst.msk [vmem:[#allocation2 + $0x8] sm:$0xff] %vm47_vm0, %v130_v45  ;;  %v98_v48 = vpop.xlane.xlu1 %97 }
  0xac   :  { %v95_v49 = vpop.xlane.xlu0 %94  ;;  %v134_v50 = vadd.f32 %v98_v48, %v69_v46 }
  0xad   :  { %v133_v51 = vadd.f32 %v95_v49, %v68_v47  ;;  %v167_v63 = vld [vmem:[#allocation2 + $0x10] sm:$0xff] }
  0xae   :  { %v165_v52 = vld [vmem:[#allocation2] sm:$0xff]  ;;  %151 = vst.msk [vmem:[#allocation2 + $0x28] sm:$0xff] %vm47_vm0, %v134_v50 }
  0xaf   :  { %183 = vperm.xlu0 %337, %v165_v52   ;;  %150 = vst.msk [vmem:[#allocation2 + $0x20] sm:$0xff] %vm47_vm0, %v133_v51  ;;  %v104_v55 = vpop.xlane.xlu1 %103  ;;  %v293_v51 = vld [vmem:[#allocation3] sm:$0x1] }
  0xb0   :  { %v101_v56 = vpop.xlane.xlu0 %100  ;;  %v136_v57 = vadd.f32 %v104_v55, %v71_v53  ;;  %v294_v52 = vmul.f32 0.9, %v293_v51 }
  0xb1   :  { %v135_v58 = vadd.f32 %v101_v56, %v70_v54  ;;  %v168_v7 = vld [vmem:[#allocation2 + $0x18] sm:$0xff] }
  0xb2   :  { %v166_v59 = vld [vmem:[#allocation2 + $0x8] sm:$0xff]  ;;  %153 = vst.msk [vmem:[#allocation2 + $0x38] sm:$0xff] %vm47_vm0, %v136_v57 }
  0xb3   :  { %188 = vperm.xlu1 %338, %v166_v59   ;;  %152 = vst.msk [vmem:[#allocation2 + $0x30] sm:$0xff] %vm47_vm0, %v135_v58  ;;  %v110_v62 = vpop.xlane.xlu1 %109 }
  0xb4   :  { %v107_v1 = vpop.xlane.xlu0 %106  ;;  %v138_v2 = vadd.f32 %v110_v62, %v73_v60 }
  0xb5   :  { %v137_v3 = vadd.f32 %v107_v1, %v72_v61  ;;  %v170_v22 = vld [vmem:[#allocation2 + $0x28] sm:$0xff] }
  0xb6   :  { %155 = vst.msk [vmem:[#allocation2 + $0x48] sm:$0xff] %vm47_vm0, %v138_v2  ;;  %v169_v14 = vld [vmem:[#allocation2 + $0x20] sm:$0xff] }
  0xb7   :  { %193 = vperm.xlu1 %338, %v167_v63   ;;  %154 = vst.msk [vmem:[#allocation2 + $0x40] sm:$0xff] %vm47_vm0, %v137_v3  ;;  %v116_v6 = vpop.xlane.xlu1 %115 }
  0xb8   :  { %v113_v8 = vpop.xlane.xlu0 %112  ;;  %v140_v9 = vadd.f32 %v116_v6, %v75_v4 }
  0xb9   :  { %v139_v10 = vadd.f32 %v113_v8, %v74_v5  ;;  %v172_v29 = vld [vmem:[#allocation2 + $0x38] sm:$0xff] }
  0xba   :  { %157 = vst.msk [vmem:[#allocation2 + $0x58] sm:$0xff] %vm47_vm0, %v140_v9  ;;  %v171_v27 = vld [vmem:[#allocation2 + $0x30] sm:$0xff] }
  0xbb   :  { %198 = vperm.xlu1 %338, %v168_v7   ;;  %156 = vst.msk [vmem:[#allocation2 + $0x50] sm:$0xff] %vm47_vm0, %v139_v10  ;;  %v122_v13 = vpop.xlane.xlu1 %121 }
  0xbc   :  { %v119_v15 = vpop.xlane.xlu0 %118  ;;  %v142_v16 = vadd.f32 %v122_v13, %v77_v11 }
  0xbd   :  { %v141_v17 = vadd.f32 %v119_v15, %v76_v12  ;;  %v174_v18 = vld [vmem:[#allocation2 + $0x48] sm:$0xff] }
  0xbe   :  { %159 = vst.msk [vmem:[#allocation2 + $0x68] sm:$0xff] %vm47_vm0, %v142_v16  ;;  %228 = vperm.xlu0 %337, %v174_v18   ;;  %v173_v31 = vld [vmem:[#allocation2 + $0x40] sm:$0xff] }
  0xbf   :  { %203 = vperm.xlu1 %338, %v169_v14   ;;  %158 = vst.msk [vmem:[#allocation2 + $0x60] sm:$0xff] %vm47_vm0, %v141_v17  ;;  %v128_v21 = vpop.xlane.xlu1 %127 }
  0xc0   :  { %v125_v23 = vpop.xlane.xlu0 %124  ;;  %v144_v24 = vadd.f32 %v128_v21, %v79_v19 }
  0xc1   :  { %v143_v25 = vadd.f32 %v125_v23, %v78_v20  ;;  %v176_v26 = vld [vmem:[#allocation2 + $0x58] sm:$0xff] }
  0xc2   :  { %161 = vst.msk [vmem:[#allocation2 + $0x78] sm:$0xff] %vm47_vm0, %v144_v24  ;;  %238 = vperm.xlu0 %337, %v176_v26   ;;  %v175_v32 = vld [vmem:[#allocation2 + $0x50] sm:$0xff] }
  0xc3   :  { %208 = vperm.xlu1 %338, %v170_v22   ;;  %160 = vst.msk [vmem:[#allocation2 + $0x70] sm:$0xff] %vm47_vm0, %v143_v25 }
  0xc5   :  { %v178_v28 = vld [vmem:[#allocation2 + $0x68] sm:$0xff] }
  0xc6   :  { %248 = vperm.xlu0 %337, %v178_v28   ;;  %v177_v33 = vld [vmem:[#allocation2 + $0x60] sm:$0xff] }
  0xc7   :  { %213 = vperm.xlu1 %338, %v171_v27  }
  0xc9   :  { %v180_v30 = vld [vmem:[#allocation2 + $0x78] sm:$0xff] }
  0xca   :  { %258 = vperm.xlu0 %337, %v180_v30   ;;  %v179_v34 = vld [vmem:[#allocation2 + $0x70] sm:$0xff] }
  0xcb   :  { %218 = vperm.xlu1 %338, %v172_v29  }
  0xcf   :  { %223 = vperm.xlu1 %338, %v173_v31  }
  0xd3   :  { %233 = vperm.xlu1 %338, %v175_v32  }
  0xd7   :  { %243 = vperm.xlu1 %338, %v177_v33  }
  0xdb   :  { %253 = vperm.xlu1 %338, %v179_v34  }
 0x12e   :  { %v184_v35 = vpop.permute.xlu0 %183 }
 0x12f   :  { %261 = vxpose.xlu1.b32.start [1/16] (narrow) %v184_v35, 8 }
 0x132   :  { %v189_v36 = vpop.permute.xlu1 %188 }
 0x133   :  { %262 = vxpose.xlu1.b32.cont [2/16] (narrow) %v189_v36, 8 }
 0x136   :  { %v194_v37 = vpop.permute.xlu1 %193 }
 0x137   :  { %263 = vxpose.xlu1.b32.cont [3/16] (narrow) %v194_v37, 8 }
 0x13a   :  { %v199_v38 = vpop.permute.xlu1 %198 }
 0x13b   :  { %264 = vxpose.xlu1.b32.cont [4/16] (narrow) %v199_v38, 8 }
 0x13d   :  { %v229_v44 = vpop.permute.xlu0 %228 }
 0x13e   :  { %v204_v39 = vpop.permute.xlu1 %203 }
 0x13f   :  { %265 = vxpose.xlu1.b32.cont [5/16] (narrow) %v204_v39, 8 }
 0x141   :  { %v239_v46 = vpop.permute.xlu0 %238 }
 0x142   :  { %v209_v40 = vpop.permute.xlu1 %208 }
 0x143   :  { %266 = vxpose.xlu1.b32.cont [6/16] (narrow) %v209_v40, 8 }
 0x145   :  { %v249_v48 = vpop.permute.xlu0 %248 }
 0x146   :  { %v214_v41 = vpop.permute.xlu1 %213 }
 0x147   :  { %267 = vxpose.xlu1.b32.cont [7/16] (narrow) %v214_v41, 8 }
 0x149   :  { %v259_v50 = vpop.permute.xlu0 %258 }
 0x14a   :  { %v219_v42 = vpop.permute.xlu1 %218 }
 0x14b   :  { %268 = vxpose.xlu1.b32.cont [8/16] (narrow) %v219_v42, 8 }
 0x14e   :  { %v224_v43 = vpop.permute.xlu1 %223 }
 0x14f   :  { %269 = vxpose.xlu1.b32.cont [9/16] (narrow) %v224_v43, 8 }
 0x152   :  { %v234_v45 = vpop.permute.xlu1 %233 }
 0x153   :  { %270 = vxpose.xlu1.b32.cont [10/16] (narrow) %v229_v44, 8 }
 0x156   :  { %v244_v47 = vpop.permute.xlu1 %243 }
 0x157   :  { %271 = vxpose.xlu1.b32.cont [11/16] (narrow) %v234_v45, 8 }
 0x15a   :  { %v254_v49 = vpop.permute.xlu1 %253 }
 0x15b   :  { %272 = vxpose.xlu1.b32.cont [12/16] (narrow) %v239_v46, 8 }
 0x15f   :  { %273 = vxpose.xlu1.b32.cont [13/16] (narrow) %v244_v47, 8 }
 0x163   :  { %274 = vxpose.xlu1.b32.cont [14/16] (narrow) %v249_v48, 8 }
 0x167   :  { %275 = vxpose.xlu1.b32.cont [15/16] (narrow) %v254_v49, 8 }
 0x16b   :  { %276 = vxpose.xlu1.b32.end [16/16] (narrow) %v259_v50, 8 }
 0x1af   :  { %v277_v53 = vpop.trf.xlu1 }
 0x1b0   :  { %v295_v54 = vadd.f32 %v294_v52, %v277_v53 }
 0x1b2   :  { %vm296_vm2 = vcmp.ge.f32.partialorder %v295_v54, 1.0 }
 0x1b3   :  { %v331_v55 = vsel %vm296_vm2, 1.0, %v412_v0 }
 0x1b4   :  { %v299_v56 = vsub.f32 %v295_v54, %v331_v55  ;;  %301 = vst [vmem:[#allocation6] sm:$0x1] %v331_v55 }
 0x1b5   :  { %372 = shalt.err (!%p369_p12)
}
 0x1b6   :  { %s373_s8 = scalar_lea.hbm %s595_s2, 16 }
 0x1b7   :  { %p374_p13 = scmp.ne.s32.totalorder %s595_s2, %s373_s8  ;;  %p377_p0 = scmp.lt.u32.totalorder %s373_s8, %s595_s2 }
 0x1b9   :  { %p379_p1 = pnand %p377_p0, %p374_p13 }
 0x1bb   :  { %382 = shalt.err (!%p379_p1)
}
 0x1bc   :  { %311 = dma.vmem_to_hbm [thread:$0]  %s309_s28, 16, %s595_s2, [#allocation5]   ;;  %300 = vst [vmem:[#allocation7] sm:$0x1] %v299_v56 }
 0x1bd   :  { %s383_s15 = scalar_lea.vmem %s561_s30, 16  ;;  %s387_s16 = scalar_lea.vmem %s561_s30, 32 }
 0x1be   :  { %p384_p2 = scmp.ne.s32.totalorder %s561_s30, %s383_s15  ;;  %p388_p3 = scmp.lt.s32.totalorder %s561_s30, %s561_s30 }
 0x1bf   :  { %p389_p4 = scmp.lt.s32.totalorder %s387_s16, %s383_s15 }
 0x1c1   :  { %p390_p5 = por %p389_p4, %p388_p3 }
 0x1c3   :  { %p391_p6 = pnand %p390_p5, %p384_p2 }
 0x1c5   :  { %394 = shalt.err (!%p391_p6)
}
 0x1c6   :  { %s395_s19 = scalar_lea.hbm %s596_s3, 16 }
 0x1c7   :  { %p396_p7 = scmp.ne.s32.totalorder %s596_s3, %s395_s19  ;;  %p399_p8 = scmp.lt.u32.totalorder %s395_s19, %s596_s3 }
 0x1c9   :  { %p401_p9 = pnand %p399_p8, %p396_p7 }
 0x1cb   :  { %404 = shalt.err (!%p401_p9)
}
 0x1cc   :  { %321 = dma.vmem_to_hbm [thread:$0]  %s561_s30, 16, %s596_s3, [#allocation8]  }
 0x1cd   :  { %407 = dma.done.wait [#allocation5], 16  }
 0x1ce   :  { %408 = vsyncadd [#allocation5], 4294967280 }
 0x1cf   :  { %409 = dma.done.wait [#allocation8], 16  }
 0x1d0   :  { %410 = vsyncadd [#allocation8], 4294967280 }
 0x1d1   :  { %328 = vsyncpa [#allocation4], 1 }
 0x1d2   :  { %329 = vsyncpa [#allocation5], 1 }
 0x1d3   :  { %330 = vsyncpa [#allocation8], 1 }

// kernel: tpu_custom_call.1
= control target key start
LH: loop header
LB: loop body
LE: loop exit
PB: predicated region body
PF: predicated region fallthrough
CT: control target
= control target key end

     0   :  { %vm66_vm0 = vcmask 261120   ;;  %vm33_vm1 = vcmask 7168   ;;  %v336_v3 = vmov 0.0   ;;  %s661_s0 = inlined_call_operand.vmem [shape: f32[128,32], index: 0, kind: input, shape index: {}]   ;;  %s662_s1 = inlined_call_operand.vmem [shape: f32[128,1], index: 1, kind: input, shape index: {}, may-alias: {1,3}]   ;;  %s663_s2 = inlined_call_operand.vmem [shape: f32[128,1], index: 2, kind: output, shape index: {0}]   ;;  %s664_s3 = inlined_call_operand.vmem [shape: f32[128,1], index: 3, kind: output, shape index: {1}, may-alias: {1,3}]  }
   0x1   :  { %v15_v0 = vld [vmem:[%s661_s0 + $0x10] sm:$0xff]  ;;  %v13_v1 = vld [vmem:[%s661_s0] sm:$0xff]  ;;  %v16_v2 = vld [vmem:[%s661_s0 + $0x18] sm:$0xff]  ;;  %36 = vst.msk [vmem:[#allocation2 + $0x10] sm:$0xff] %vm33_vm1, %v336_v3 }
   0x2   :  { %34 = vst.msk [vmem:[#allocation2] sm:$0xff] %vm33_vm1, %v336_v3  ;;  %35 = vst.msk [vmem:[#allocation2 + $0x8] sm:$0xff] %vm33_vm1, %v336_v3  ;;  %v73_v4 = vsel %vm66_vm0, %v15_v0, 0.0  ;;  %v67_v5 = vsel %vm66_vm0, %v13_v1, 0.0  ;;  %v14_v6 = vld [vmem:[%s661_s0 + $0x8] sm:$0xff]  ;;  %v76_v7 = vsel %vm66_vm0, %v16_v2, 0.0 }
   0x3   :  { %37 = vst.msk [vmem:[#allocation2 + $0x18] sm:$0xff] %vm33_vm1, %v336_v3  ;;  %38 = vst.msk [vmem:[#allocation2 + $0x20] sm:$0xff] %vm33_vm1, %v336_v3  ;;  %74 = vadd.xlane.f32.xlu1 %v73_v4  ;;  %68 = vadd.xlane.f32.xlu0 %v67_v5  ;;  %v70_v8 = vsel %vm66_vm0, %v14_v6, 0.0  ;;  %v18_v9 = vld [vmem:[%s661_s0 + $0x28] sm:$0xff]  ;;  %v17_v10 = vld [vmem:[%s661_s0 + $0x20] sm:$0xff] }
   0x4   :  { %39 = vst.msk [vmem:[#allocation2 + $0x28] sm:$0xff] %vm33_vm1, %v336_v3  ;;  %40 = vst.msk [vmem:[#allocation2 + $0x30] sm:$0xff] %vm33_vm1, %v336_v3  ;;  %v82_v11 = vsel %vm66_vm0, %v18_v9, 0.0  ;;  %v79_v12 = vsel %vm66_vm0, %v17_v10, 0.0  ;;  %v20_v13 = vld [vmem:[%s661_s0 + $0x38] sm:$0xff]  ;;  %v19_v14 = vld [vmem:[%s661_s0 + $0x30] sm:$0xff] }
   0x5   :  { %41 = vst.msk [vmem:[#allocation2 + $0x38] sm:$0xff] %vm33_vm1, %v336_v3  ;;  %42 = vst.msk [vmem:[#allocation2 + $0x40] sm:$0xff] %vm33_vm1, %v336_v3  ;;  %v88_v15 = vsel %vm66_vm0, %v20_v13, 0.0  ;;  %v85_v16 = vsel %vm66_vm0, %v19_v14, 0.0  ;;  %v22_v17 = vld [vmem:[%s661_s0 + $0x48] sm:$0xff]  ;;  %v21_v18 = vld [vmem:[%s661_s0 + $0x40] sm:$0xff] }
   0x6   :  { %43 = vst.msk [vmem:[#allocation2 + $0x48] sm:$0xff] %vm33_vm1, %v336_v3  ;;  %44 = vst.msk [vmem:[#allocation2 + $0x50] sm:$0xff] %vm33_vm1, %v336_v3  ;;  %v94_v19 = vsel %vm66_vm0, %v22_v17, 0.0  ;;  %v91_v20 = vsel %vm66_vm0, %v21_v18, 0.0  ;;  %v24_v21 = vld [vmem:[%s661_s0 + $0x58] sm:$0xff]  ;;  %v23_v22 = vld [vmem:[%s661_s0 + $0x50] sm:$0xff] }
   0x7   :  { %45 = vst.msk [vmem:[#allocation2 + $0x58] sm:$0xff] %vm33_vm1, %v336_v3  ;;  %46 = vst.msk [vmem:[#allocation2 + $0x60] sm:$0xff] %vm33_vm1, %v336_v3  ;;  %77 = vadd.xlane.f32.xlu1 %v76_v7  ;;  %71 = vadd.xlane.f32.xlu0 %v70_v8  ;;  %v100_v23 = vsel %vm66_vm0, %v24_v21, 0.0  ;;  %v97_v24 = vsel %vm66_vm0, %v23_v22, 0.0  ;;  %v26_v25 = vld [vmem:[%s661_s0 + $0x68] sm:$0xff]  ;;  %v25_v26 = vld [vmem:[%s661_s0 + $0x60] sm:$0xff] }
   0x8   :  { %47 = vst.msk [vmem:[#allocation2 + $0x68] sm:$0xff] %vm33_vm1, %v336_v3  ;;  %48 = vst.msk [vmem:[#allocation2 + $0x70] sm:$0xff] %vm33_vm1, %v336_v3  ;;  %v106_v27 = vsel %vm66_vm0, %v26_v25, 0.0  ;;  %v103_v28 = vsel %vm66_vm0, %v25_v26, 0.0  ;;  %v28_v29 = vld [vmem:[%s661_s0 + $0x78] sm:$0xff]  ;;  %v27_v30 = vld [vmem:[%s661_s0 + $0x70] sm:$0xff] }
   0x9   :  { %49 = vst.msk [vmem:[#allocation2 + $0x78] sm:$0xff] %vm33_vm1, %v336_v3  ;;  %v112_v31 = vsel %vm66_vm0, %v28_v29, 0.0  ;;  %v109_v32 = vsel %vm66_vm0, %v27_v30, 0.0  ;;  %v52_v33 = vld [vmem:[#allocation2 + $0x10] sm:$0xff]  ;;  %v50_v34 = vld [vmem:[#allocation2] sm:$0xff]  ;;  %v51_v40 = vld [vmem:[#allocation2 + $0x8] sm:$0xff] }
   0xa   :  { %v53_v39 = vld [vmem:[#allocation2 + $0x18] sm:$0xff]  ;;  %v169_v41 = vld [vmem:[%s662_s1 + $0x10] sm:$0xff]  ;;  %v167_v42 = vld [vmem:[%s662_s1] sm:$0xff] }
   0xb   :  { %83 = vadd.xlane.f32.xlu1 %v82_v11  ;;  %80 = vadd.xlane.f32.xlu0 %v79_v12  ;;  %v55_v47 = vld [vmem:[#allocation2 + $0x28] sm:$0xff]  ;;  %v54_v48 = vld [vmem:[#allocation2 + $0x20] sm:$0xff]  ;;  %v185_v49 = vmul.f32 0.9, %v169_v41  ;;  %v183_v50 = vmul.f32 0.9, %v167_v42 }
   0xc   :  { %v170_v51 = vld [vmem:[%s662_s1 + $0x18] sm:$0xff]  ;;  %v168_v52 = vld [vmem:[%s662_s1 + $0x8] sm:$0xff]  ;;  %v171_v57 = vld [vmem:[%s662_s1 + $0x20] sm:$0xff] }
   0xd   :  { %v172_v55 = vld [vmem:[%s662_s1 + $0x28] sm:$0xff]  ;;  %v57_v59 = vld [vmem:[#allocation2 + $0x38] sm:$0xff]  ;;  %v56_v62 = vld [vmem:[#allocation2 + $0x30] sm:$0xff]  ;;  %v186_v1 = vmul.f32 0.9, %v170_v51 }
   0xe   :  { %v184_v2 = vmul.f32 0.9, %v168_v52  ;;  %v188_v4 = vmul.f32 0.9, %v172_v55  ;;  %v187_v5 = vmul.f32 0.9, %v171_v57 }
   0xf   :  { %89 = vadd.xlane.f32.xlu1 %v88_v15  ;;  %86 = vadd.xlane.f32.xlu0 %v85_v16  ;;  %v174_v8 = vld [vmem:[%s662_s1 + $0x38] sm:$0xff]  ;;  %v173_v10 = vld [vmem:[%s662_s1 + $0x30] sm:$0xff]  ;;  %v59_v12 = vld [vmem:[#allocation2 + $0x48] sm:$0xff] }
  0x10   :  { %v58_v17 = vld [vmem:[#allocation2 + $0x40] sm:$0xff]  ;;  %v190_v22 = vmul.f32 0.9, %v174_v8  ;;  %v61_v30 = vld [vmem:[#allocation2 + $0x58] sm:$0xff]  ;;  %v64_v8 = vld [vmem:[#allocation2 + $0x70] sm:$0xff] }
  0x13   :  { %95 = vadd.xlane.f32.xlu1 %v94_v19  ;;  %92 = vadd.xlane.f32.xlu0 %v91_v20 }
  0x17   :  { %101 = vadd.xlane.f32.xlu1 %v100_v23  ;;  %98 = vadd.xlane.f32.xlu0 %v97_v24  ;;  %v189_v23 = vmul.f32 0.9, %v173_v10 }
  0x1b   :  { %107 = vadd.xlane.f32.xlu1 %v106_v27  ;;  %104 = vadd.xlane.f32.xlu0 %v103_v28 }
  0x1f   :  { %113 = vadd.xlane.f32.xlu1 %v112_v31  ;;  %110 = vadd.xlane.f32.xlu0 %v109_v32 }
  0x90   :  { %v75_v35 = vpop.xlane.xlu1 %74  ;;  %v69_v36 = vpop.xlane.xlu0 %68 }
  0x91   :  { %v117_v37 = vadd.f32 %v75_v35, %v52_v33  ;;  %v115_v38 = vadd.f32 %v69_v36, %v50_v34  ;;  %v60_v35 = vld [vmem:[#allocation2 + $0x50] sm:$0xff] }
  0x93   :  { %134 = vst.msk [vmem:[#allocation2 + $0x10] sm:$0xff] %vm33_vm1, %v117_v37  ;;  %132 = vst.msk [vmem:[#allocation2] sm:$0xff] %vm33_vm1, %v115_v38 }
  0x94   :  { %v78_v43 = vpop.xlane.xlu1 %77  ;;  %v72_v44 = vpop.xlane.xlu0 %71 }
  0x95   :  { %v118_v45 = vadd.f32 %v78_v43, %v53_v39  ;;  %v116_v46 = vadd.f32 %v72_v44, %v51_v40 }
  0x97   :  { %135 = vst.msk [vmem:[#allocation2 + $0x18] sm:$0xff] %vm33_vm1, %v118_v45  ;;  %133 = vst.msk [vmem:[#allocation2 + $0x8] sm:$0xff] %vm33_vm1, %v116_v46 }
  0x98   :  { %v84_v53 = vpop.xlane.xlu1 %83  ;;  %v81_v54 = vpop.xlane.xlu0 %80 }
  0x99   :  { %v120_v56 = vadd.f32 %v84_v53, %v55_v47  ;;  %v119_v58 = vadd.f32 %v81_v54, %v54_v48  ;;  %v63_v48 = vld [vmem:[#allocation2 + $0x68] sm:$0xff]  ;;  %v62_v53 = vld [vmem:[#allocation2 + $0x60] sm:$0xff] }
  0x9a   :  { %v153_v60 = vld [vmem:[#allocation2 + $0x10] sm:$0xff]  ;;  %v151_v61 = vld [vmem:[#allocation2] sm:$0xff] }
  0x9b   :  { %v201_v63 = vadd.f32 %v185_v49, %v153_v60  ;;  %v199_v0 = vadd.f32 %v183_v50, %v151_v61  ;;  %137 = vst.msk [vmem:[#allocation2 + $0x28] sm:$0xff] %vm33_vm1, %v120_v56  ;;  %136 = vst.msk [vmem:[#allocation2 + $0x20] sm:$0xff] %vm33_vm1, %v119_v58 }
  0x9c   :  { %v90_v6 = vpop.xlane.xlu1 %89  ;;  %v87_v7 = vpop.xlane.xlu0 %86 }
  0x9d   :  { %vm217_vm2 = vcmp.ge.f32.partialorder %v201_v63, 1.0  ;;  %vm215_vm3 = vcmp.ge.f32.partialorder %v199_v0, 1.0  ;;  %v122_v9 = vadd.f32 %v90_v6, %v57_v59  ;;  %v121_v11 = vadd.f32 %v87_v7, %v56_v62 }
  0x9e   :  { %v321_v13 = vsel %vm217_vm2, 1.0, %v336_v3  ;;  %v319_v14 = vsel %vm215_vm3, 1.0, %v336_v3  ;;  %v154_v15 = vld [vmem:[#allocation2 + $0x18] sm:$0xff]  ;;  %v152_v16 = vld [vmem:[#allocation2 + $0x8] sm:$0xff] }
  0x9f   :  { %v265_v18 = vsub.f32 %v201_v63, %v321_v13  ;;  %297 = vst.msk [vmem:[%s663_s2 + $0x10] sm:$0xff] %vm33_vm1, %v321_v13  ;;  %v263_v19 = vsub.f32 %v199_v0, %v319_v14  ;;  %295 = vst.msk [vmem:[%s663_s2] sm:$0xff] %vm33_vm1, %v319_v14  ;;  %v202_v20 = vadd.f32 %v186_v1, %v154_v15 }
  0xa0   :  { %v200_v21 = vadd.f32 %v184_v2, %v152_v16  ;;  %139 = vst.msk [vmem:[#allocation2 + $0x38] sm:$0xff] %vm33_vm1, %v122_v9  ;;  %138 = vst.msk [vmem:[#allocation2 + $0x30] sm:$0xff] %vm33_vm1, %v121_v11  ;;  %v96_v24 = vpop.xlane.xlu1 %95  ;;  %v93_v25 = vpop.xlane.xlu0 %92  ;;  %v65_v2 = vld [vmem:[#allocation2 + $0x78] sm:$0xff] }
  0xa1   :  { %281 = vst.msk [vmem:[%s664_s3 + $0x10] sm:$0xff] %vm33_vm1, %v265_v18  ;;  %279 = vst.msk [vmem:[%s664_s3] sm:$0xff] %vm33_vm1, %v263_v19  ;;  %vm218_vm4 = vcmp.ge.f32.partialorder %v202_v20, 1.0  ;;  %v124_v27 = vadd.f32 %v96_v24, %v59_v12  ;;  %v123_v29 = vadd.f32 %v93_v25, %v58_v17 }
  0xa2   :  { %vm216_vm5 = vcmp.ge.f32.partialorder %v200_v21, 1.0  ;;  %v322_v31 = vsel %vm218_vm4, 1.0, %v336_v3  ;;  %v156_v33 = vld [vmem:[#allocation2 + $0x28] sm:$0xff]  ;;  %v155_v34 = vld [vmem:[#allocation2 + $0x20] sm:$0xff] }
  0xa3   :  { %v320_v32 = vsel %vm216_vm5, 1.0, %v336_v3  ;;  %v266_v36 = vsub.f32 %v202_v20, %v322_v31  ;;  %298 = vst.msk [vmem:[%s663_s2 + $0x18] sm:$0xff] %vm33_vm1, %v322_v31  ;;  %v204_v38 = vadd.f32 %v188_v4, %v156_v33  ;;  %v203_v39 = vadd.f32 %v187_v5, %v155_v34  ;;  %141 = vst.msk [vmem:[#allocation2 + $0x48] sm:$0xff] %vm33_vm1, %v124_v27 }
  0xa4   :  { %v264_v37 = vsub.f32 %v200_v21, %v320_v32  ;;  %296 = vst.msk [vmem:[%s663_s2 + $0x8] sm:$0xff] %vm33_vm1, %v320_v32  ;;  %140 = vst.msk [vmem:[#allocation2 + $0x40] sm:$0xff] %vm33_vm1, %v123_v29  ;;  %v102_v42 = vpop.xlane.xlu1 %101  ;;  %v99_v43 = vpop.xlane.xlu0 %98 }
  0xa5   :  { %vm220_vm6 = vcmp.ge.f32.partialorder %v204_v38, 1.0  ;;  %vm219_vm7 = vcmp.ge.f32.partialorder %v203_v39, 1.0  ;;  %v126_v45 = vadd.f32 %v102_v42, %v61_v30  ;;  %v125_v47 = vadd.f32 %v99_v43, %v60_v35 }
  0xa6   :  { %v324_v49 = vsel %vm220_vm6, 1.0, %v336_v3  ;;  %v323_v50 = vsel %vm219_vm7, 1.0, %v336_v3 }
  0xa7   :  { %v158_v51 = vld [vmem:[#allocation2 + $0x38] sm:$0xff]  ;;  %v157_v52 = vld [vmem:[#allocation2 + $0x30] sm:$0xff]  ;;  %v268_v54 = vsub.f32 %v204_v38, %v324_v49  ;;  %300 = vst.msk [vmem:[%s663_s2 + $0x28] sm:$0xff] %vm33_vm1, %v324_v49  ;;  %v267_v55 = vsub.f32 %v203_v39, %v323_v50  ;;  %299 = vst.msk [vmem:[%s663_s2 + $0x20] sm:$0xff] %vm33_vm1, %v323_v50 }
  0xa8   :  { %v176_v26 = vld [vmem:[%s662_s1 + $0x48] sm:$0xff]  ;;  %v175_v28 = vld [vmem:[%s662_s1 + $0x40] sm:$0xff]  ;;  %v206_v56 = vadd.f32 %v190_v22, %v158_v51  ;;  %v205_v57 = vadd.f32 %v189_v23, %v157_v52  ;;  %143 = vst.msk [vmem:[#allocation2 + $0x58] sm:$0xff] %vm33_vm1, %v126_v45  ;;  %142 = vst.msk [vmem:[#allocation2 + $0x50] sm:$0xff] %vm33_vm1, %v125_v47  ;;  %v108_v60 = vpop.xlane.xlu1 %107  ;;  %v105_v61 = vpop.xlane.xlu0 %104 }
  0xa9   :  { %v192_v40 = vmul.f32 0.9, %v176_v26  ;;  %v191_v41 = vmul.f32 0.9, %v175_v28  ;;  %282 = vst.msk [vmem:[%s664_s3 + $0x18] sm:$0xff] %vm33_vm1, %v266_v36  ;;  %280 = vst.msk [vmem:[%s664_s3 + $0x8] sm:$0xff] %vm33_vm1, %v264_v37  ;;  %v128_v63 = vadd.f32 %v108_v60, %v63_v48  ;;  %v127_v1 = vadd.f32 %v105_v61, %v62_v53 }
  0xaa   :  { %vm222_vm8 = vcmp.ge.f32.partialorder %v206_v56, 1.0  ;;  %vm221_vm9 = vcmp.ge.f32.partialorder %v205_v57, 1.0  ;;  %v160_v6 = vld [vmem:[#allocation2 + $0x48] sm:$0xff] }
  0xab   :  { %v326_v4 = vsel %vm222_vm8, 1.0, %v336_v3  ;;  %v325_v5 = vsel %vm221_vm9, 1.0, %v336_v3  ;;  %v159_v7 = vld [vmem:[#allocation2 + $0x40] sm:$0xff]  ;;  %v208_v11 = vadd.f32 %v192_v40, %v160_v6  ;;  %145 = vst.msk [vmem:[#allocation2 + $0x68] sm:$0xff] %vm33_vm1, %v128_v63  ;;  %144 = vst.msk [vmem:[#allocation2 + $0x60] sm:$0xff] %vm33_vm1, %v127_v1 }
  0xac   :  { %v270_v9 = vsub.f32 %v206_v56, %v326_v4  ;;  %302 = vst.msk [vmem:[%s663_s2 + $0x38] sm:$0xff] %vm33_vm1, %v326_v4  ;;  %v269_v10 = vsub.f32 %v205_v57, %v325_v5  ;;  %301 = vst.msk [vmem:[%s663_s2 + $0x30] sm:$0xff] %vm33_vm1, %v325_v5  ;;  %v207_v12 = vadd.f32 %v191_v41, %v159_v7  ;;  %v114_v15 = vpop.xlane.xlu1 %113  ;;  %v111_v16 = vpop.xlane.xlu0 %110 }
  0xad   :  { %vm224_vm10 = vcmp.ge.f32.partialorder %v208_v11, 1.0  ;;  %v130_v17 = vadd.f32 %v114_v15, %v65_v2  ;;  %v129_v18 = vadd.f32 %v111_v16, %v64_v8 }
  0xae   :  { %vm223_vm11 = vcmp.ge.f32.partialorder %v207_v12, 1.0  ;;  %v328_v19 = vsel %vm224_vm10, 1.0, %v336_v3 }
  0xaf   :  { %v327_v20 = vsel %vm223_vm11, 1.0, %v336_v3  ;;  %v162_v21 = vld [vmem:[#allocation2 + $0x58] sm:$0xff]  ;;  %v161_v22 = vld [vmem:[#allocation2 + $0x50] sm:$0xff]  ;;  %v272_v24 = vsub.f32 %v208_v11, %v328_v19  ;;  %304 = vst.msk [vmem:[%s663_s2 + $0x48] sm:$0xff] %vm33_vm1, %v328_v19  ;;  %147 = vst.msk [vmem:[#allocation2 + $0x78] sm:$0xff] %vm33_vm1, %v130_v17 }
  0xb0   :  { %v178_v44 = vld [vmem:[%s662_s1 + $0x58] sm:$0xff]  ;;  %v177_v46 = vld [vmem:[%s662_s1 + $0x50] sm:$0xff]  ;;  %v271_v25 = vsub.f32 %v207_v12, %v327_v20  ;;  %303 = vst.msk [vmem:[%s663_s2 + $0x40] sm:$0xff] %vm33_vm1, %v327_v20  ;;  %146 = vst.msk [vmem:[#allocation2 + $0x70] sm:$0xff] %vm33_vm1, %v129_v18 }
  0xb1   :  { %v194_v58 = vmul.f32 0.9, %v178_v44  ;;  %v193_v59 = vmul.f32 0.9, %v177_v46  ;;  %284 = vst.msk [vmem:[%s664_s3 + $0x28] sm:$0xff] %vm33_vm1, %v268_v54  ;;  %283 = vst.msk [vmem:[%s664_s3 + $0x20] sm:$0xff] %vm33_vm1, %v267_v55 }
  0xb2   :  { %v164_v32 = vld [vmem:[#allocation2 + $0x68] sm:$0xff]  ;;  %v163_v33 = vld [vmem:[#allocation2 + $0x60] sm:$0xff] }
  0xb3   :  { %v210_v26 = vadd.f32 %v194_v58, %v162_v21  ;;  %v209_v27 = vadd.f32 %v193_v59, %v161_v22 }
  0xb5   :  { %vm226_vm12 = vcmp.ge.f32.partialorder %v210_v26, 1.0  ;;  %vm225_vm13 = vcmp.ge.f32.partialorder %v209_v27, 1.0 }
  0xb6   :  { %v330_v30 = vsel %vm226_vm12, 1.0, %v336_v3  ;;  %v329_v31 = vsel %vm225_vm13, 1.0, %v336_v3  ;;  %v166_v41 = vld [vmem:[#allocation2 + $0x78] sm:$0xff] }
  0xb7   :  { %v274_v35 = vsub.f32 %v210_v26, %v330_v30  ;;  %306 = vst.msk [vmem:[%s663_s2 + $0x58] sm:$0xff] %vm33_vm1, %v330_v30  ;;  %v273_v36 = vsub.f32 %v209_v27, %v329_v31  ;;  %305 = vst.msk [vmem:[%s663_s2 + $0x50] sm:$0xff] %vm33_vm1, %v329_v31  ;;  %v165_v42 = vld [vmem:[#allocation2 + $0x70] sm:$0xff] }
  0xb8   :  { %v180_v62 = vld [vmem:[%s662_s1 + $0x68] sm:$0xff]  ;;  %v179_v0 = vld [vmem:[%s662_s1 + $0x60] sm:$0xff] }
  0xb9   :  { %v196_v13 = vmul.f32 0.9, %v180_v62  ;;  %v195_v14 = vmul.f32 0.9, %v179_v0  ;;  %286 = vst.msk [vmem:[%s664_s3 + $0x38] sm:$0xff] %vm33_vm1, %v270_v9  ;;  %285 = vst.msk [vmem:[%s664_s3 + $0x30] sm:$0xff] %vm33_vm1, %v269_v10 }
  0xbb   :  { %v212_v37 = vadd.f32 %v196_v13, %v164_v32  ;;  %v211_v38 = vadd.f32 %v195_v14, %v163_v33 }
  0xbd   :  { %vm228_vm14 = vcmp.ge.f32.partialorder %v212_v37, 1.0  ;;  %vm227_vm15 = vcmp.ge.f32.partialorder %v211_v38, 1.0 }
  0xbe   :  { %v332_v39 = vsel %vm228_vm14, 1.0, %v336_v3  ;;  %v331_v40 = vsel %vm227_vm15, 1.0, %v336_v3 }
  0xbf   :  { %v276_v43 = vsub.f32 %v212_v37, %v332_v39  ;;  %308 = vst.msk [vmem:[%s663_s2 + $0x68] sm:$0xff] %vm33_vm1, %v332_v39  ;;  %v275_v44 = vsub.f32 %v211_v38, %v331_v40  ;;  %307 = vst.msk [vmem:[%s663_s2 + $0x60] sm:$0xff] %vm33_vm1, %v331_v40 }
  0xc0   :  { %v182_v23 = vld [vmem:[%s662_s1 + $0x78] sm:$0xff]  ;;  %v181_v28 = vld [vmem:[%s662_s1 + $0x70] sm:$0xff] }
  0xc1   :  { %288 = vst.msk [vmem:[%s664_s3 + $0x48] sm:$0xff] %vm33_vm1, %v272_v24  ;;  %287 = vst.msk [vmem:[%s664_s3 + $0x40] sm:$0xff] %vm33_vm1, %v271_v25  ;;  %v198_v29 = vmul.f32 0.9, %v182_v23  ;;  %v197_v34 = vmul.f32 0.9, %v181_v28 }
  0xc2   :  { %290 = vst.msk [vmem:[%s664_s3 + $0x58] sm:$0xff] %vm33_vm1, %v274_v35  ;;  %289 = vst.msk [vmem:[%s664_s3 + $0x50] sm:$0xff] %vm33_vm1, %v273_v36 }
  0xc3   :  { %v214_v45 = vadd.f32 %v198_v29, %v166_v41  ;;  %v213_v46 = vadd.f32 %v197_v34, %v165_v42  ;;  %292 = vst.msk [vmem:[%s664_s3 + $0x68] sm:$0xff] %vm33_vm1, %v276_v43  ;;  %291 = vst.msk [vmem:[%s664_s3 + $0x60] sm:$0xff] %vm33_vm1, %v275_v44 }
  0xc5   :  { %vm230_vm0 = vcmp.ge.f32.partialorder %v214_v45, 1.0  ;;  %vm229_vm2 = vcmp.ge.f32.partialorder %v213_v46, 1.0 }
  0xc6   :  { %v334_v47 = vsel %vm230_vm0, 1.0, %v336_v3  ;;  %v333_v48 = vsel %vm229_vm2, 1.0, %v336_v3 }
  0xc7   :  { %v278_v49 = vsub.f32 %v214_v45, %v334_v47  ;;  %310 = vst.msk [vmem:[%s663_s2 + $0x78] sm:$0xff] %vm33_vm1, %v334_v47  ;;  %v277_v50 = vsub.f32 %v213_v46, %v333_v48  ;;  %309 = vst.msk [vmem:[%s663_s2 + $0x70] sm:$0xff] %vm33_vm1, %v333_v48 }
  0xc9   :  { %294 = vst.msk [vmem:[%s664_s3 + $0x78] sm:$0xff] %vm33_vm1, %v278_v49  ;;  %293 = vst.msk [vmem:[%s664_s3 + $0x70] sm:$0xff] %vm33_vm1, %v277_v50 }

</bundles_post_ra>
